<compile_context>
chip_gen: v7x
topology: tpu7x:2x2x1
jax: 0.10.0
libtpu: 0.0.40
codegen_flags: <defaults>
</compile_context>

<pallas_src>
import jax
import jax.numpy as jnp
from jax.experimental import pallas as pl
from jax.experimental.pallas import tpu as pltpu

NUM_ACTION = 3
IN_DIM = 7
HID = 96
OUT_DIM = NUM_ACTION ** 6          # 729
BN_EPS = 1e-5

# Padded (lane/sublane friendly) sizes.
IN_PAD = 8
HID_PAD = 128
OUT_PAD = 768                      # 6 * 128 (also 3 * 256 for v6e/v7x MXU)

MAX_TB = 2048                      # VMEM-safe even on v7x (64 MiB physical)


def _round_up(x, m):
    return ((x + m - 1) // m) * m


def dqn_kernel(x_ref, w1_ref, b1_ref, w2_ref, b2_ref, w3_ref, b3_ref, out_ref):
    # x_ref: (TB, 8) f32; weights bf16; biases f32 (1, N); out bf16 (TB, 768).
    x = x_ref[...].astype(jnp.bfloat16)

    # ---- Layer 1: Linear(+folded BN) -> ReLU (epilogue in f32 on MXU acc) ----
    h1 = jnp.dot(x, w1_ref[...], preferred_element_type=jnp.float32)
    h1 = jnp.maximum(h1 + b1_ref[...], 0.0)

    # ---- Layer 2: Linear(+folded BN) -> ReLU ----
    h2 = jnp.dot(h1.astype(jnp.bfloat16), w2_ref[...],
                 preferred_element_type=jnp.float32)
    h2 = jnp.maximum(h2 + b2_ref[...], 0.0)

    # ---- Layer 3: Linear(128 -> 768 padded); padded cols of b3 are -inf ----
    out = jnp.dot(h2.astype(jnp.bfloat16), w3_ref[...],
                  preferred_element_type=jnp.float32)
    out_ref[...] = (out + b3_ref[...]).astype(jnp.bfloat16)


def _batch_tiling(B, block_b):
    """Padding-aware batch tiling: TB multiple of 16 (bf16 sublane packing),
    >=2 tiles whenever the batch allows (v7x megacore), TB capped for VMEM."""
    block_b = min(block_b, MAX_TB)
    n_tiles = pl.cdiv(B, block_b)
    if n_tiles == 1 and B >= 32:
        n_tiles = 2                               # both v7x TensorCores busy
    TB = min(_round_up(pl.cdiv(B, n_tiles), 16), MAX_TB)
    n_tiles = pl.cdiv(B, TB)
    Bp = n_tiles * TB
    return TB, Bp, n_tiles


def dqn_forward_padded(x, kparams, *, block_b=1024):
    """x: (B, 7) float32. Returns padded (Bp, 768) bf16 Q-values.

    Rows >= B are garbage (padding); columns 729..767 are -inf, so a
    downstream argmax over the full 768 lanes of a valid row is safe.
    """
    B = x.shape[0]
    TB, Bp, n_tiles = _batch_tiling(B, block_b)

    # Pad batch -> Bp rows and features 7 -> 8 lanes in one op; keep f32.
    xp = jnp.pad(x, ((0, Bp - B), (0, IN_PAD - IN_DIM)))

    def const_spec(shape):
        # Full-array block, constant index -> stays VMEM-resident across tiles.
        return pl.BlockSpec(shape, lambda i: (0, 0))

    weight_bytes = (IN_PAD * HID_PAD + HID_PAD * HID_PAD + HID_PAD * OUT_PAD) * 2
    bias_bytes = (HID_PAD + HID_PAD + OUT_PAD) * 4
    cost = pl.CostEstimate(
        flops=2 * Bp * (IN_PAD * HID_PAD + HID_PAD * HID_PAD + HID_PAD * OUT_PAD),
        transcendentals=0,
        bytes_accessed=Bp * IN_PAD * 4 + Bp * OUT_PAD * 2 + weight_bytes + bias_bytes,
    )

    out = pl.pallas_call(
        dqn_kernel,
        out_shape=jax.ShapeDtypeStruct((Bp, OUT_PAD), jnp.bfloat16),
        grid=(n_tiles,),
        in_specs=[
            pl.BlockSpec((TB, IN_PAD), lambda i: (i, 0)),     # x tile (f32)
            const_spec((IN_PAD, HID_PAD)),                    # w1
            const_spec((1, HID_PAD)),                         # b1
            const_spec((HID_PAD, HID_PAD)),                   # w2
            const_spec((1, HID_PAD)),                         # b2
            const_spec((HID_PAD, OUT_PAD)),                   # w3
            const_spec((1, OUT_PAD)),                         # b3
        ],
        out_specs=pl.BlockSpec((TB, OUT_PAD), lambda i: (i, 0)),
        compiler_params=pltpu.CompilerParams(
            dimension_semantics=("parallel",),                # megacore on v7x
            vmem_limit_bytes=32 * 1024 * 1024),
        cost_estimate=cost,
    )(xp, kparams["w1"], kparams["b1"], kparams["w2"], kparams["b2"],
      kparams["w3"], kparams["b3"])

    return out


def dqn_forward(x, kparams, *, block_b=1024):
    """Semantic equivalent of DQN.forward: (B, 7) f32 -> (B, 729) f32.

    NOTE: performance-sensitive consumers (e.g. argmax action selection over
    the Q-vector) should use `dqn_forward_padded` and index the padded bf16
    output directly; this wrapper's slice/cast re-touches the whole output.
    """
    B = x.shape[0]
    q = dqn_forward_padded(x, kparams, block_b=block_b)
    return q[:B, :OUT_DIM].astype(jnp.float32)


def init_params(key):
    """Mirror the PyTorch init (kaiming-normal fan_in/relu weights, zero bias,
    fresh BatchNorm) and fold eval-mode BN into the Linears.

    Returns (kernel_params, ref_params):
      kernel_params: zero-padded shapes, bf16 weights, f32 (1,N) biases
                     (b3's padded columns are -inf so padded Q lanes are
                     neutral for argmax).
      ref_params:    unpadded f32 BN-folded weights for the JAX reference.
    """
    k1, k2, k3 = jax.random.split(key, 3)

    def kaiming(k, fan_in, fan_out):
        std = (2.0 / fan_in) ** 0.5
        # stored as (in, out) so the kernel computes x @ W
        return jax.random.normal(k, (fan_in, fan_out), dtype=jnp.float32) * std

    def bn_fold(w, b, n):
        # Eval-mode BN with gamma=1, beta=0, running_mean=0, running_var=1.
        gamma = jnp.ones((n,), jnp.float32)
        beta = jnp.zeros((n,), jnp.float32)
        mean = jnp.zeros((n,), jnp.float32)
        var = jnp.ones((n,), jnp.float32)
        scale = gamma / jnp.sqrt(var + BN_EPS)
        w_eff = w * scale[None, :]
        b_eff = (b - mean) * scale + beta
        return w_eff, b_eff

    w1 = kaiming(k1, IN_DIM, HID)
    w2 = kaiming(k2, HID, HID)
    w3 = kaiming(k3, HID, OUT_DIM)
    b1 = jnp.zeros((HID,), jnp.float32)
    b2 = jnp.zeros((HID,), jnp.float32)
    b3 = jnp.zeros((OUT_DIM,), jnp.float32)

    w1f, b1f = bn_fold(w1, b1, HID)
    w2f, b2f = bn_fold(w2, b2, HID)
    w3f, b3f = w3, b3                      # no BN after the last Linear

    ref = {"w1": w1f, "b1": b1f, "w2": w2f, "b2": b2f, "w3": w3f, "b3": b3f}

    def pad_w(w, rows, cols):
        return jnp.pad(w, ((0, rows - w.shape[0]), (0, cols - w.shape[1])))

    def pad_b(b, cols, pad_value=0.0):
        return jnp.pad(b, (0, cols - b.shape[0]),
                       constant_values=pad_value)[None, :]   # (1, cols) f32

    kern = {
        "w1": pad_w(w1f, IN_PAD, HID_PAD).astype(jnp.bfloat16),
        "b1": pad_b(b1f, HID_PAD),
        "w2": pad_w(w2f, HID_PAD, HID_PAD).astype(jnp.bfloat16),
        "b2": pad_b(b2f, HID_PAD),
        "w3": pad_w(w3f, HID_PAD, OUT_PAD).astype(jnp.bfloat16),
        # padded Q columns get -inf so argmax over the padded output is safe
        "b3": pad_b(b3f, OUT_PAD, pad_value=-jnp.inf),
    }
    return kern, ref


def dqn_forward_ref(x, p):
    """Pure-JAX f32 reference (BN already folded into weights/biases)."""
    h1 = jnp.maximum(x @ p["w1"] + p["b1"], 0.0)
    h2 = jnp.maximum(h1 @ p["w2"] + p["b2"], 0.0)
    return h2 @ p["w3"] + p["b3"]


if __name__ == "__main__":
    key = jax.random.PRNGKey(0)
    k_params, k_x = jax.random.split(key)

    kparams, refparams = init_params(k_params)
    # Small batch of "states" — PyTorch forward takes (B, 7) float input.
    B = 8
    x = jax.random.normal(k_x, (B, IN_DIM), dtype=jnp.float32)

    # Fast path: padded bf16 Q-values straight from the kernel.
    q_pad = dqn_forward_padded(x, kparams)
    q_pad = jax.block_until_ready(q_pad)

    assert q_pad.shape[1] == OUT_PAD and q_pad.shape[0] >= B
    assert q_pad.dtype == jnp.bfloat16

    # Semantic forward() result for the correctness check.
    out = q_pad[:B, :OUT_DIM].astype(jnp.float32)
    ref = dqn_forward_ref(x, refparams)
    assert out.shape == (B, OUT_DIM)

    # bf16 matmul inputs + bf16 output store (f32 accumulation) vs. f32
    # reference: allow ~3% of the output scale as error budget.
    rel_err = jnp.max(jnp.abs(out - ref)) / (jnp.max(jnp.abs(ref)) + 1e-6)
    assert float(rel_err) < 3e-2, f"mismatch vs JAX reference (rel_err={rel_err})"

    # Padded columns must be -inf (argmax-neutral) for downstream consumers.
    assert bool(jnp.all(jnp.isneginf(q_pad[:B, OUT_DIM:].astype(jnp.float32))))

    print("KERNEL_OK")
</pallas_src>

<mosaic_0001>
module attributes {stable_mosaic.version = 11 : i64} {
  func.func @dqn_kernel(%arg0: i32, %arg1: memref<16x8xf32, #tpu.memory_space<vmem>>, %arg2: memref<8x128xbf16, #tpu.memory_space<vmem>>, %arg3: memref<1x128xf32, #tpu.memory_space<vmem>>, %arg4: memref<128x128xbf16, #tpu.memory_space<vmem>>, %arg5: memref<1x128xf32, #tpu.memory_space<vmem>>, %arg6: memref<128x768xbf16, #tpu.memory_space<vmem>>, %arg7: memref<1x768xf32, #tpu.memory_space<vmem>>, %arg8: memref<16x768xbf16, #tpu.memory_space<vmem>>) attributes {dimension_semantics = [#tpu.dimension_semantics<parallel>], iteration_bounds = array<i64: 1>, scalar_prefetch = 0 : i64, scratch_operands = 0 : i64, tpu.core_type = #tpu.core_type<tc>, window_params = [{transform_indices = @transform_0, window_bounds = array<i64: 16, 8>}, {pipeline_mode = #tpu.pipeline_mode<synchronous>, transform_indices = @transform_1, window_bounds = array<i64: 8, 128>}, {pipeline_mode = #tpu.pipeline_mode<synchronous>, transform_indices = @transform_2, window_bounds = array<i64: 1, 128>}, {pipeline_mode = #tpu.pipeline_mode<synchronous>, transform_indices = @transform_3, window_bounds = array<i64: 128, 128>}, {pipeline_mode = #tpu.pipeline_mode<synchronous>, transform_indices = @transform_4, window_bounds = array<i64: 1, 128>}, {pipeline_mode = #tpu.pipeline_mode<synchronous>, transform_indices = @transform_5, window_bounds = array<i64: 128, 768>}, {pipeline_mode = #tpu.pipeline_mode<synchronous>, transform_indices = @transform_6, window_bounds = array<i64: 1, 768>}, {transform_indices = @transform_7, window_bounds = array<i64: 16, 768>}]} {
    %c0 = arith.constant 0 : index
    %c0_0 = arith.constant 0 : index
    %0 = vector.load %arg1[%c0, %c0_0] : memref<16x8xf32, #tpu.memory_space<vmem>>, vector<16x8xf32>
    %1 = arith.truncf %0 : vector<16x8xf32> to vector<16x8xbf16>
    %c0_1 = arith.constant 0 : index
    %c0_2 = arith.constant 0 : index
    %2 = vector.load %arg2[%c0_1, %c0_2] : memref<8x128xbf16, #tpu.memory_space<vmem>>, vector<8x128xbf16>
    %cst = arith.constant dense<0.000000e+00> : vector<16x128xf32>
    %3 = tpu.matmul %1, %2, %cst {dimension_numbers = #tpu.dot_dimension_numbers<[1], [0], [0], [1], [0, 0, 1, 1], [], []>} : vector<16x8xbf16>, vector<8x128xbf16>, vector<16x128xf32> -> vector<16x128xf32>
    %c0_3 = arith.constant 0 : index
    %c0_4 = arith.constant 0 : index
    %4 = vector.load %arg3[%c0_3, %c0_4] : memref<1x128xf32, #tpu.memory_space<vmem>>, vector<1x128xf32>
    %5 = vector.broadcast %4 : vector<1x128xf32> to vector<16x128xf32>
    %6 = arith.addf %3, %5 : vector<16x128xf32>
    %cst_5 = arith.constant 0.000000e+00 : f32
    %7 = vector.broadcast %cst_5 : f32 to vector<16x128xf32>
    %8 = arith.maximumf %6, %7 : vector<16x128xf32>
    %9 = arith.truncf %8 : vector<16x128xf32> to vector<16x128xbf16>
    %c0_6 = arith.constant 0 : index
    %c0_7 = arith.constant 0 : index
    %10 = vector.load %arg4[%c0_6, %c0_7] : memref<128x128xbf16, #tpu.memory_space<vmem>>, vector<128x128xbf16>
    %cst_8 = arith.constant dense<0.000000e+00> : vector<16x128xf32>
    %11 = tpu.matmul %9, %10, %cst_8 {dimension_numbers = #tpu.dot_dimension_numbers<[1], [0], [0], [1], [0, 0, 1, 1], [], []>} : vector<16x128xbf16>, vector<128x128xbf16>, vector<16x128xf32> -> vector<16x128xf32>
    %c0_9 = arith.constant 0 : index
    %c0_10 = arith.constant 0 : index
    %12 = vector.load %arg5[%c0_9, %c0_10] : memref<1x128xf32, #tpu.memory_space<vmem>>, vector<1x128xf32>
    %13 = vector.broadcast %12 : vector<1x128xf32> to vector<16x128xf32>
    %14 = arith.addf %11, %13 : vector<16x128xf32>
    %cst_11 = arith.constant 0.000000e+00 : f32
    %15 = vector.broadcast %cst_11 : f32 to vector<16x128xf32>
    %16 = arith.maximumf %14, %15 : vector<16x128xf32>
    %17 = arith.truncf %16 : vector<16x128xf32> to vector<16x128xbf16>
    %c0_12 = arith.constant 0 : index
    %c0_13 = arith.constant 0 : index
    %18 = vector.load %arg6[%c0_12, %c0_13] : memref<128x768xbf16, #tpu.memory_space<vmem>>, vector<128x768xbf16>
    %cst_14 = arith.constant dense<0.000000e+00> : vector<16x768xf32>
    %19 = tpu.matmul %17, %18, %cst_14 {dimension_numbers = #tpu.dot_dimension_numbers<[1], [0], [0], [1], [0, 0, 1, 1], [], []>} : vector<16x128xbf16>, vector<128x768xbf16>, vector<16x768xf32> -> vector<16x768xf32>
    %c0_15 = arith.constant 0 : index
    %c0_16 = arith.constant 0 : index
    %20 = vector.load %arg7[%c0_15, %c0_16] : memref<1x768xf32, #tpu.memory_space<vmem>>, vector<1x768xf32>
    %21 = vector.broadcast %20 : vector<1x768xf32> to vector<16x768xf32>
    %22 = arith.addf %19, %21 : vector<16x768xf32>
    %23 = arith.truncf %22 : vector<16x768xf32> to vector<16x768xbf16>
    %c0_17 = arith.constant 0 : index
    %c0_18 = arith.constant 0 : index
    %24 = vector.load %arg8[%c0_17, %c0_18] : memref<16x768xbf16, #tpu.memory_space<vmem>>, vector<16x768xbf16>
    tpu.vector_store %arg8[%c0_17, %c0_18], %23 {strides = array<i32>} : memref<16x768xbf16, #tpu.memory_space<vmem>>, vector<16x768xbf16>,
    return
  }
  func.func @transform_0(%arg0: i32) -> (i32, i32) {
    %c0_i32 = arith.constant 0 : i32
    %c0_i32_0 = arith.constant 0 : i32
    return %arg0, %c0_i32 : i32, i32
  }
  func.func @transform_1(%arg0: i32) -> (i32, i32) {
    %c0_i32 = arith.constant 0 : i32
    %c0_i32_0 = arith.constant 0 : i32
    %c0_i32_1 = arith.constant 0 : i32
    return %c0_i32, %c0_i32_0 : i32, i32
  }
  func.func @transform_2(%arg0: i32) -> (i32, i32) {
    %c0_i32 = arith.constant 0 : i32
    %c0_i32_0 = arith.constant 0 : i32
    %c0_i32_1 = arith.constant 0 : i32
    return %c0_i32, %c0_i32_0 : i32, i32
  }
  func.func @transform_3(%arg0: i32) -> (i32, i32) {
    %c0_i32 = arith.constant 0 : i32
    %c0_i32_0 = arith.constant 0 : i32
    %c0_i32_1 = arith.constant 0 : i32
    return %c0_i32, %c0_i32_0 : i32, i32
  }
  func.func @transform_4(%arg0: i32) -> (i32, i32) {
    %c0_i32 = arith.constant 0 : i32
    %c0_i32_0 = arith.constant 0 : i32
    %c0_i32_1 = arith.constant 0 : i32
    return %c0_i32, %c0_i32_0 : i32, i32
  }
  func.func @transform_5(%arg0: i32) -> (i32, i32) {
    %c0_i32 = arith.constant 0 : i32
    %c0_i32_0 = arith.constant 0 : i32
    %c0_i32_1 = arith.constant 0 : i32
    return %c0_i32, %c0_i32_0 : i32, i32
  }
  func.func @transform_6(%arg0: i32) -> (i32, i32) {
    %c0_i32 = arith.constant 0 : i32
    %c0_i32_0 = arith.constant 0 : i32
    %c0_i32_1 = arith.constant 0 : i32
    return %c0_i32, %c0_i32_0 : i32, i32
  }
  func.func @transform_7(%arg0: i32) -> (i32, i32) {
    %c0_i32 = arith.constant 0 : i32
    %c0_i32_0 = arith.constant 0 : i32
    return %arg0, %c0_i32 : i32, i32
  }
}

</mosaic_0001>

<bundles_post_ra>
// kernel: tpu_custom_call.1
= control target key start
LH: loop header
LB: loop body
LE: loop exit
PB: predicated region body
PF: predicated region fallthrough
CT: control target
= control target key end

     0   :  { %12 = vsyncpa [#allocation3], 0  ;;  %s1123_s0 = inlined_call_operand.vmem [shape: f32[16,8], index: 0, kind: input, shape index: {}]   ;;  %s1124_s1 = inlined_call_operand.vmem [shape: bf16[8,128], index: 1, kind: input, shape index: {}]   ;;  %s1125_s2 = inlined_call_operand.vmem [shape: f32[1,128], index: 2, kind: input, shape index: {}]   ;;  %s1126_s3 = inlined_call_operand.hbm [shape: bf16[128,128], index: 3, kind: input, shape index: {}]   ;;  %s1127_s4 = inlined_call_operand.vmem [shape: f32[1,128], index: 4, kind: input, shape index: {}]   ;;  %s1128_s5 = inlined_call_operand.hbm [shape: bf16[128,768], index: 5, kind: input, shape index: {}]   ;;  %s1129_s6 = inlined_call_operand.vmem [shape: f32[1,768], index: 6, kind: input, shape index: {}]   ;;  %s1130_s7 = inlined_call_operand.hbm [shape: bf16[16,768], index: 7, kind: output, shape index: {}]  }
   0x1   :  { %13 = vsyncpa [#allocation6], 0 }
   0x2   :  { %14 = vsyncpa [#allocation4], 0  ;;  %s1013_s24 = smov [#allocation2]   ;;  %s941_s28 = scalar_lea.hbm %s1126_s3, 1024 }
   0x3   :  { %s26_s25 = sshll.u32 %s1013_s24, 4  ;;  %p942_p0 = scmp.ne.s32.totalorder %s1126_s3, %s941_s28  ;;  %s27_s25 = int_to_ptr.vmem [resolvable:$true] %s26_s25 }
   0x4   :  { %p945_p1 = scmp.lt.u32.totalorder %s941_s28, %s1126_s3 }
   0x6   :  { %p947_p2 = pnand %p945_p1, %p942_p0 }
   0x8   :  { %950 = shalt.err (!%p947_p2)
}
   0x9   :  { %s951_s10 = scalar_lea.vmem %s27_s25, 1024  ;;  %p956_p4 = scmp.lt.s32.totalorder %s27_s25, %s27_s25 }
   0xa   :  { %p952_p3 = scmp.ne.s32.totalorder %s27_s25, %s951_s10  ;;  %p957_p5 = scmp.lt.s32.totalorder %s951_s10, %s951_s10 }
   0xc   :  { %p958_p6 = por %p957_p5, %p956_p4 }
   0xe   :  { %p959_p7 = pnand %p958_p6, %p952_p3 }
  0x10   :  { %962 = shalt.err (!%p959_p7)
}
  0x11   :  { %s1014_s11 = smov 64   ;;  %s1015_s12 = smov 4  }
  0x12   :  { %32 = dma.hbm_to_vmem [thread:$0]  %s1126_s3, 1024, %s27_s25, [#allocation3], %s1014_s11, %s1014_s11, %s1015_s12  }
  0x13   :  { %s1016_s15 = smov [#allocation5]   ;;  %s963_s19 = scalar_lea.hbm %s1128_s5, 6144 }
  0x14   :  { %s40_s16 = sshll.u32 %s1016_s15, 4  ;;  %p964_p8 = scmp.ne.s32.totalorder %s1128_s5, %s963_s19  ;;  %s41_s16 = int_to_ptr.vmem [resolvable:$true] %s40_s16 }
  0x15   :  { %p967_p9 = scmp.lt.u32.totalorder %s963_s19, %s1128_s5 }
  0x17   :  { %p969_p10 = pnand %p967_p9, %p964_p8 }
  0x19   :  { %972 = shalt.err (!%p969_p10)
}
  0x1a   :  { %s973_s24 = scalar_lea.vmem %s41_s16, 6144  ;;  %p978_p12 = scmp.lt.s32.totalorder %s41_s16, %s41_s16 }
  0x1b   :  { %p974_p11 = scmp.ne.s32.totalorder %s41_s16, %s973_s24  ;;  %p979_p13 = scmp.lt.s32.totalorder %s973_s24, %s973_s24 }
  0x1d   :  { %p980_p0 = por %p979_p13, %p978_p12 }
  0x1f   :  { %p981_p1 = pnand %p980_p0, %p974_p11 }
  0x21   :  { %984 = shalt.err (!%p981_p1)
}
  0x22   :  { %s1017_s3 = smov 384   ;;  %s1018_s25 = smov 24  }
  0x23   :  { %46 = dma.hbm_to_vmem [thread:$0]  %s1128_s5, 6144, %s41_s16, [#allocation6], %s1017_s3, %s1017_s3, %s1018_s25  }
  0x24   :  { %1007 = dma.done.wait [#allocation3], 1024  }
  0x25   :  { %1008 = vsyncadd [#allocation3], 4294966272 }
  0x26   :  { %1009 = dma.done.wait [#allocation6], 6144  }
  0x27   :  { %1010 = vsyncadd [#allocation6], 4294961152  ;;  %v1019_v0 = vmov 0.0   ;;  %vm1020_vm0 = vmmov 0   ;;  %vm71_vm1 = vcmask 1043456   ;;  %v56_v2 = vld [vmem:[%s1123_s0] sm:$0xff] }
  0x28   :  { %825 = vmatprep.subr.bf16.mxu0 %v1019_v0  ;;  %827 = vmatprep.mubr.msk.bf16.mxu0 %vm1020_vm0, %v1019_v0  ;;  %v59_v1 = vld [vmem:[%s1124_s1] sm:$0xf]  ;;  %v57_v3 = vld [vmem:[%s1123_s0 + $0x8] sm:$0xff]  ;;  %vm67_vm2 = vcmask 64512   ;;  %v863_v8 = vld [vmem:[#allocation2 + $0x10] sm:$0xff]   ;;  %v1021_v57 = vmov 0  }
  0x29   :  { %831 = vmatprep.subr.bf16.mxu1 %v1019_v0  ;;  %847 = vmatprep.mubr.msk.bf16.mxu1 %vm1020_vm0, %v1019_v0  ;;  %v73_v4 = vsel %vm71_vm1, %v59_v1, 0  ;;  %v58_v5 = vpack.c.bf16 %v57_v3, %v56_v2  ;;  %v861_v6 = vld [vmem:[#allocation2] sm:$0xff]   ;;  %v862_v7 = vld [vmem:[#allocation2 + $0x8] sm:$0xff]   ;;  %v864_v9 = vld [vmem:[#allocation2 + $0x18] sm:$0xff]  }
  0x2a   :  { %826 = vmatpush3.bf16.msra.mxu0 %v73_v4  ;;  %832 = vmatpush3.bf16.msra.mxu1 %v861_v6  ;;  %v865_v10 = vld [vmem:[#allocation2 + $0x20] sm:$0xff]   ;;  %v866_v11 = vld [vmem:[#allocation2 + $0x28] sm:$0xff]   ;;  %v867_v12 = vld [vmem:[#allocation2 + $0x30] sm:$0xff]  }
  0x2b   :  { %833 = vmatprep.subr.bf16.mxu1 %v1019_v0  ;;  %v868_v13 = vld [vmem:[#allocation2 + $0x38] sm:$0xff]   ;;  %v874_v16 = vld [vmem:[#allocation5 + $0xc] ss:$24 sps:$4 sm:$0xff]   ;;  %v875_v18 = vld [vmem:[#allocation5 + $0x30] ss:$24 sps:$4 sm:$0xff]  }
  0x2c   :  { %v869_v14 = vld [vmem:[#allocation5] ss:$24 sps:$4 sm:$0xff]   ;;  %v871_v15 = vld [vmem:[#allocation5 + $0x4] ss:$24 sps:$4 sm:$0xff]   ;;  %v877_v17 = vld [vmem:[#allocation5 + $0x34] ss:$24 sps:$4 sm:$0xff]  }
  0x2d   :  { %828 = vmatmul.mubr.msk.bf16.vlgmr.msra.gmra.mrb[0].mxu0 %vm67_vm2, %v58_v5  ;;  %554 = vmatprep.subr.bf16.mxu0 %v871_v15  ;;  %v883_v19 = vld [vmem:[#allocation5 + $0x64] ss:$24 sps:$4 sm:$0xff]   ;;  %v881_v20 = vld [vmem:[#allocation5 + $0x60] ss:$24 sps:$4 sm:$0xff]   ;;  %v889_v21 = vld [vmem:[#allocation5 + $0x94] ss:$24 sps:$4 sm:$0xff]  }
  0x2e   :  { %834 = vmatpush3.bf16.msra.mxu1 %v862_v7  ;;  %555 = vmatpush1.bf16.msra.mxu0 %v869_v14  ;;  %v887_v22 = vld [vmem:[#allocation5 + $0x90] ss:$24 sps:$4 sm:$0xff]   ;;  %v895_v23 = vld [vmem:[#allocation5 + $0xc4] ss:$24 sps:$4 sm:$0xff]   ;;  %v893_v24 = vld [vmem:[#allocation5 + $0xc0] ss:$24 sps:$4 sm:$0xff]  }
  0x2f   :  { %835 = vmatprep.subr.bf16.mxu1 %v1019_v0  ;;  %556 = vmatprep.subr.bf16.mxu0 %v877_v17  ;;  %v901_v25 = vld [vmem:[#allocation5 + $0xf4] ss:$24 sps:$4 sm:$0xff]   ;;  %v899_v26 = vld [vmem:[#allocation5 + $0xf0] ss:$24 sps:$4 sm:$0xff]   ;;  %v743_v27 = vld [vmem:[%s1125_s2] ss:$0 sm:$0xff] }
  0x30   :  { %v872_v36 = vld [vmem:[#allocation5 + $0x8] ss:$24 sps:$4 sm:$0xff]   ;;  %v880_v38 = vld [vmem:[#allocation5 + $0x3c] ss:$24 sps:$4 sm:$0xff]   ;;  %v878_v39 = vld [vmem:[#allocation5 + $0x38] ss:$24 sps:$4 sm:$0xff]   ;;  %586 = vmatprep.mubr.bf16.mxu0 %v1021_v57 }
  0x31   :  { %v886_v40 = vld [vmem:[#allocation5 + $0x6c] ss:$24 sps:$4 sm:$0xff]   ;;  %v884_v41 = vld [vmem:[#allocation5 + $0x68] ss:$24 sps:$4 sm:$0xff]   ;;  %v892_v42 = vld [vmem:[#allocation5 + $0x9c] ss:$24 sps:$4 sm:$0xff]  }
  0x32   :  { %836 = vmatpush3.bf16.msra.mxu1 %v863_v8  ;;  %557 = vmatpush1.bf16.msra.mxu0 %v875_v18  ;;  %v890_v43 = vld [vmem:[#allocation5 + $0x98] ss:$24 sps:$4 sm:$0xff]   ;;  %v898_v44 = vld [vmem:[#allocation5 + $0xcc] ss:$24 sps:$4 sm:$0xff]   ;;  %v896_v45 = vld [vmem:[#allocation5 + $0xc8] ss:$24 sps:$4 sm:$0xff]  }
  0x33   :  { %837 = vmatprep.subr.bf16.mxu1 %v1019_v0  ;;  %558 = vmatprep.subr.bf16.mxu0 %v883_v19  ;;  %v904_v46 = vld [vmem:[#allocation5 + $0xfc] ss:$24 sps:$4 sm:$0xff]   ;;  %v902_v47 = vld [vmem:[#allocation5 + $0xf8] ss:$24 sps:$4 sm:$0xff]   ;;  %v910_v50 = vld [vmem:[#allocation5 + $0x12c] ss:$24 sps:$4 sm:$0xff]   ;;  %v284_v19 = vlaneseq }
  0x34   :  { %v907_v48 = vld [vmem:[#allocation5 + $0x124] ss:$24 sps:$4 sm:$0xff]   ;;  %v905_v49 = vld [vmem:[#allocation5 + $0x120] ss:$24 sps:$4 sm:$0xff]   ;;  %v913_v52 = vld [vmem:[#allocation5 + $0x154] ss:$24 sps:$4 sm:$0xff]  }
  0x35   :  { %v908_v51 = vld [vmem:[#allocation5 + $0x128] ss:$24 sps:$4 sm:$0xff]   ;;  %v916_v54 = vld [vmem:[#allocation5 + $0x15c] ss:$24 sps:$4 sm:$0xff]   ;;  %v914_v55 = vld [vmem:[#allocation5 + $0x158] ss:$24 sps:$4 sm:$0xff]  }
  0x36   :  { %838 = vmatpush3.bf16.msra.mxu1 %v864_v9  ;;  %559 = vmatpush1.bf16.msra.mxu0 %v881_v20  ;;  %v911_v53 = vld [vmem:[#allocation5 + $0x150] ss:$24 sps:$4 sm:$0xff]   ;;  %v919_v56 = vld [vmem:[#allocation5 + $0x14] ss:$24 sps:$4 sm:$0xff]   ;;  %v745_v58 = vld [vmem:[%s1127_s4] ss:$0 sm:$0xff] }
  0x37   :  { %839 = vmatprep.subr.bf16.mxu1 %v1019_v0  ;;  %560 = vmatprep.subr.bf16.mxu0 %v889_v21  ;;  %v917_v3 = vld [vmem:[#allocation5 + $0x10] ss:$24 sps:$4 sm:$0xff]   ;;  %v922_v5 = vld [vmem:[#allocation5 + $0x44] ss:$24 sps:$4 sm:$0xff]   ;;  %v920_v6 = vld [vmem:[#allocation5 + $0x40] ss:$24 sps:$4 sm:$0xff]  }
  0x38   :  { %v925_v7 = vld [vmem:[#allocation5 + $0x74] ss:$24 sps:$4 sm:$0xff]   ;;  %v923_v8 = vld [vmem:[#allocation5 + $0x70] ss:$24 sps:$4 sm:$0xff]   ;;  %v928_v9 = vld [vmem:[#allocation5 + $0xa4] ss:$24 sps:$4 sm:$0xff]  }
  0x39   :  { %v932_v14 = vld [vmem:[#allocation5 + $0x100] ss:$24 sps:$4 sm:$0xff]   ;;  %v937_v15 = vld [vmem:[#allocation5 + $0x134] ss:$24 sps:$4 sm:$0xff]   ;;  %v940_v17 = vld [vmem:[#allocation5 + $0x164] ss:$24 sps:$4 sm:$0xff]  }
  0x3a   :  { %840 = vmatpush3.bf16.msra.mxu1 %v865_v10  ;;  %561 = vmatpush1.bf16.msra.mxu0 %v887_v22  ;;  %v926_v10 = vld [vmem:[#allocation5 + $0xa0] ss:$24 sps:$4 sm:$0xff]   ;;  %v285_v20 = vshrl.u32 %v284_v19, 7 }
  0x3b   :  { %841 = vmatprep.subr.bf16.mxu1 %v1019_v0  ;;  %562 = vmatprep.subr.bf16.mxu0 %v895_v23  ;;  %v938_v18 = vld [vmem:[#allocation5 + $0x160] ss:$24 sps:$4 sm:$0xff]  }
  0x3c   :  { %v286_v21 = vsub.s32 0, %v285_v20  ;;  %v294_v22 = vsub.s32 2, %v285_v20  ;;  %v282_v23 = vld [vmem:[%s1129_s6] sm:$0x3f]  ;;  %s1022_s6 = smov [#allocation7]  }
  0x3d   :  { %s730_s12 = sshll.u32 %s1022_s6, 4  ;;  %s731_s12 = int_to_ptr.vmem [resolvable:$true] %s730_s12 }
  0x3e   :  { %842 = vmatpush3.bf16.msra.mxu1 %v866_v11  ;;  %563 = vmatpush1.bf16.msra.mxu0 %v893_v24  ;;  %v931_v11 = vld [vmem:[#allocation5 + $0xd4] ss:$24 sps:$4 sm:$0xff]   ;;  %v290_v24 = vsub.s32 1, %v285_v20  ;;  %s985_s13 = scalar_lea.vmem %s731_s12, 768  ;;  %p990_p3 = scmp.lt.s32.totalorder %s731_s12, %s731_s12 }
  0x3f   :  { %843 = vmatprep.subr.bf16.mxu1 %v1019_v0  ;;  %564 = vmatprep.subr.bf16.mxu0 %v901_v25  ;;  %v298_v25 = vsub.s32 3, %v285_v20  ;;  %p986_p2 = scmp.ne.s32.totalorder %s731_s12, %s985_s13  ;;  %p991_p4 = scmp.lt.s32.totalorder %s985_s13, %s985_s13 }
  0x41   :  { %p992_p5 = por %p991_p4, %p990_p3 }
  0x42   :  { %844 = vmatpush3.bf16.msra.mxu1 %v867_v12  ;;  %565 = vmatpush1.bf16.msra.mxu0 %v899_v26  ;;  %v929_v12 = vld [vmem:[#allocation5 + $0xd0] ss:$24 sps:$4 sm:$0xff]   ;;  %v287_v26 = vrot.slane %v282_v23, %v286_v21 }
  0x43   :  { %845 = vmatprep.subr.bf16.mxu1 %v1019_v0  ;;  %566 = vmatprep.subr.bf16.mxu0 %v907_v48  ;;  %p993_p6 = pnand %p992_p5, %p986_p2 }
  0x46   :  { %846 = vmatpush3.bf16.msra.mxu1 %v868_v13  ;;  %567 = vmatpush1.bf16.msra.mxu0 %v905_v49  ;;  %v934_v13 = vld [vmem:[#allocation5 + $0x104] ss:$24 sps:$4 sm:$0xff]  }
  0x47   :  { %597 = vmatprep.subr.bf16.mxu1 %v874_v16  ;;  %568 = vmatprep.subr.bf16.mxu0 %v913_v52  ;;  %v935_v16 = vld [vmem:[#allocation5 + $0x130] ss:$24 sps:$4 sm:$0xff]  }
  0x4a   :  { %569 = vmatpush1.bf16.msra.mxu0 %v911_v53 }
  0x4b   :  { %640 = vmatprep.subr.bf16.mxu0 %v919_v56 }
 0x100   :  { %v109_v28 = vpop.f32.mrb[0].mxu0 }
 0x101   :  { %v110_v29 = vadd.f32 %v743_v27, %v109_v28  ;;  %v829_v30 = vpop.f32.mrb[1].mxu0  ;;  %v291_v28 = vrot.slane %v282_v23, %v290_v24 }
 0x102   :  { %v112_v31 = vpop.f32.mrb[2].mxu0 }
 0x103   :  { %v113_v32 = vadd.f32 %v743_v27, %v112_v31  ;;  %v830_v33 = vpop.f32.mrb[3].mxu0  ;;  %v116_v34 = vmax.f32 %v110_v29, 0.0  ;;  %v295_v27 = vrot.slane %v282_v23, %v294_v22  ;;  %v299_v29 = vrot.slane %v282_v23, %v298_v25 }
 0x105   :  { %v117_v35 = vmax.f32 %v113_v32, 0.0 }
 0x107   :  { %v118_v37 = vpack.c.bf16 %v117_v35, %v116_v34 }
 0x109   :  { %848 = vmatmul.mubr.bf16.vlgmr.msra.gmra.mrb[0].mxu1 %v118_v37 }
 0x10a   :  { %598 = vmatpush1.bf16.msra.mxu1 %v872_v36  ;;  %629 = vmatprep.mubr.bf16.mxu1 %v1021_v57 }
 0x10b   :  { %599 = vmatprep.subr.bf16.mxu1 %v880_v38 }
 0x10e   :  { %600 = vmatpush1.bf16.msra.mxu1 %v878_v39 }
 0x10f   :  { %601 = vmatprep.subr.bf16.mxu1 %v886_v40 }
 0x112   :  { %602 = vmatpush1.bf16.msra.mxu1 %v884_v41 }
 0x113   :  { %603 = vmatprep.subr.bf16.mxu1 %v892_v42 }
 0x116   :  { %604 = vmatpush1.bf16.msra.mxu1 %v890_v43 }
 0x117   :  { %605 = vmatprep.subr.bf16.mxu1 %v898_v44 }
 0x11a   :  { %606 = vmatpush1.bf16.msra.mxu1 %v896_v45 }
 0x11b   :  { %607 = vmatprep.subr.bf16.mxu1 %v904_v46 }
 0x11e   :  { %608 = vmatpush1.bf16.msra.mxu1 %v902_v47 }
 0x11f   :  { %609 = vmatprep.subr.bf16.mxu1 %v910_v50  ;;  %v302_v50 = vsub.s32 4, %v285_v20 }
 0x121   :  { %v303_v52 = vrot.slane %v282_v23, %v302_v50 }
 0x122   :  { %610 = vmatpush1.bf16.msra.mxu1 %v908_v51  ;;  %v306_v51 = vsub.s32 5, %v285_v20 }
 0x123   :  { %611 = vmatprep.subr.bf16.mxu1 %v916_v54 }
 0x124   :  { %v307_v53 = vrot.slane %v282_v23, %v306_v51 }
 0x126   :  { %612 = vmatpush1.bf16.msra.mxu1 %v914_v55 }
 0x1dc   :  { %v224_v59 = vpop.f32.mrb[0].mxu1 }
 0x1dd   :  { %v225_v60 = vadd.f32 %v745_v58, %v224_v59  ;;  %v849_v61 = vpop.f32.mrb[1].mxu1 }
 0x1de   :  { %v227_v62 = vpop.f32.mrb[2].mxu1 }
 0x1df   :  { %v228_v63 = vadd.f32 %v745_v58, %v227_v62  ;;  %v850_v0 = vpop.f32.mrb[3].mxu1  ;;  %v231_v1 = vmax.f32 %v225_v60, 0.0 }
 0x1e1   :  { %v232_v2 = vmax.f32 %v228_v63, 0.0 }
 0x1e3   :  { %v233_v4 = vpack.c.bf16 %v232_v2, %v231_v1 }
 0x1e5   :  { %587 = vmatmul.mubr.bf16.vlgmr.msra.gmra.mrb[4].mxu0 %v233_v4  ;;  %630 = vmatmul.mubr.bf16.vlgmr.msra.gmra.mrb[4].mxu1 %v233_v4 }
 0x1e6   :  { %641 = vmatpush1.bf16.msra.mxu0 %v917_v3  ;;  %672 = vmatprep.mubr.bf16.mxu0 %v1021_v57 }
 0x1e7   :  { %642 = vmatprep.subr.bf16.mxu0 %v922_v5 }
 0x1ea   :  { %643 = vmatpush1.bf16.msra.mxu0 %v920_v6 }
 0x1eb   :  { %644 = vmatprep.subr.bf16.mxu0 %v925_v7 }
 0x1ee   :  { %645 = vmatpush1.bf16.msra.mxu0 %v923_v8 }
 0x1ef   :  { %646 = vmatprep.subr.bf16.mxu0 %v928_v9 }
 0x1f2   :  { %647 = vmatpush1.bf16.msra.mxu0 %v926_v10 }
 0x1f3   :  { %648 = vmatprep.subr.bf16.mxu0 %v931_v11 }
 0x1f6   :  { %649 = vmatpush1.bf16.msra.mxu0 %v929_v12 }
 0x1f7   :  { %650 = vmatprep.subr.bf16.mxu0 %v934_v13 }
 0x1fa   :  { %651 = vmatpush1.bf16.msra.mxu0 %v932_v14 }
 0x1fb   :  { %652 = vmatprep.subr.bf16.mxu0 %v937_v15 }
 0x1fe   :  { %653 = vmatpush1.bf16.msra.mxu0 %v935_v16 }
 0x1ff   :  { %654 = vmatprep.subr.bf16.mxu0 %v940_v17 }
 0x202   :  { %655 = vmatpush1.bf16.msra.mxu0 %v938_v18 }
 0x205   :  { %673 = vmatmul.mubr.bf16.vlgmr.msra.gmra.mrb[8].mxu0 %v233_v4 }
 0x2b8   :  { %v588_v30 = vpop.f32.mrb[4].mxu0  ;;  %v631_v31 = vpop.f32.mrb[4].mxu1 }
 0x2b9   :  { %v589_v32 = vadd.f32 %v588_v30, %v287_v26  ;;  %v632_v33 = vadd.f32 %v631_v31, %v295_v27  ;;  %v590_v34 = vpop.f32.mrb[5].mxu0  ;;  %v633_v35 = vpop.f32.mrb[5].mxu1 }
 0x2ba   :  { %v591_v36 = vadd.f32 %v590_v34, %v291_v28  ;;  %v634_v37 = vadd.f32 %v633_v35, %v299_v29  ;;  %v592_v38 = vpop.f32.mrb[6].mxu0  ;;  %v635_v39 = vpop.f32.mrb[6].mxu1 }
 0x2bb   :  { %v593_v40 = vadd.f32 %v592_v38, %v287_v26  ;;  %v636_v41 = vadd.f32 %v635_v39, %v295_v27  ;;  %v594_v42 = vpop.f32.mrb[7].mxu0  ;;  %v637_v43 = vpop.f32.mrb[7].mxu1 }
 0x2bc   :  { %v808_v44 = vpack.c.bf16 %v591_v36, %v589_v32  ;;  %v809_v45 = vpack.c.bf16 %v634_v37, %v632_v33  ;;  %v595_v46 = vadd.f32 %v594_v42, %v291_v28  ;;  %v638_v47 = vadd.f32 %v637_v43, %v299_v29 }
 0x2be   :  { %719 = vst [vmem:[#allocation7] sm:$0xff] %v808_v44  ;;  %720 = vst [vmem:[#allocation7 + $0x8] sm:$0xff] %v809_v45  ;;  %v811_v48 = vpack.c.bf16 %v595_v46, %v593_v40  ;;  %v812_v49 = vpack.c.bf16 %v638_v47, %v636_v41 }
 0x2c0   :  { %722 = vst [vmem:[#allocation7 + $0x18] sm:$0xff] %v811_v48  ;;  %723 = vst [vmem:[#allocation7 + $0x20] sm:$0xff] %v812_v49 }
 0x2d8   :  { %v674_v54 = vpop.f32.mrb[8].mxu0 }
 0x2d9   :  { %v675_v55 = vadd.f32 %v674_v54, %v303_v52  ;;  %v676_v56 = vpop.f32.mrb[9].mxu0 }
 0x2da   :  { %v677_v57 = vadd.f32 %v676_v56, %v307_v53  ;;  %v678_v58 = vpop.f32.mrb[10].mxu0 }
 0x2db   :  { %v679_v59 = vadd.f32 %v678_v58, %v303_v52  ;;  %v680_v60 = vpop.f32.mrb[11].mxu0 }
 0x2dc   :  { %v810_v61 = vpack.c.bf16 %v677_v57, %v675_v55  ;;  %v681_v62 = vadd.f32 %v680_v60, %v307_v53 }
 0x2de   :  { %721 = vst [vmem:[#allocation7 + $0x10] sm:$0xff] %v810_v61  ;;  %v813_v63 = vpack.c.bf16 %v681_v62, %v679_v59 }
 0x2e0   :  { %724 = vst [vmem:[#allocation7 + $0x28] sm:$0xff] %v813_v63 }
 0x2e1   :  { %996 = shalt.err (!%p993_p6)
}
 0x2e2   :  { %s997_s16 = scalar_lea.hbm %s1130_s7, 768 }
 0x2e3   :  { %p998_p7 = scmp.ne.s32.totalorder %s1130_s7, %s997_s16  ;;  %p1001_p8 = scmp.lt.u32.totalorder %s997_s16, %s1130_s7 }
 0x2e5   :  { %p1003_p9 = pnand %p1001_p8, %p998_p7 }
 0x2e7   :  { %1006 = shalt.err (!%p1003_p9)
}
 0x2e8   :  { %736 = dma.vmem_to_hbm [thread:$0]  %s731_s12, 768, %s1130_s7, [#allocation4], %s1017_s3, %s1017_s3, %s1018_s25  }
 0x2e9   :  { %1011 = dma.done.wait [#allocation4], 768  }
 0x2ea   :  { %1012 = vsyncadd [#allocation4], 4294966528 }
 0x2eb   :  { %740 = vsyncpa [#allocation3], 1 }
 0x2ec   :  { %741 = vsyncpa [#allocation6], 1 }
 0x2ed   :  { %742 = vsyncpa [#allocation4], 1 }

</bundles_post_ra>
